<compile_context>
chip_gen: v5e
topology: v5e:2x2
jax: 0.10.0
libtpu: 0.0.40
codegen_flags: <defaults>
</compile_context>

<pallas_src>
import jax
import jax.numpy as jnp
from jax.experimental import pallas as pl
from jax.experimental.pallas import tpu as pltpu


def _round_up(x, m):
    return (x + m - 1) // m * m


# ----------------------------------------------------------------------------
# Pallas kernel 1: tiled MXU matmul, bf16 inputs, f32 accumulation.
# ----------------------------------------------------------------------------
def _mm_kernel(a_ref, b_ref, o_ref, acc_ref):
    @pl.when(pl.program_id(2) == 0)
    def _():
        acc_ref[...] = jnp.zeros_like(acc_ref)

    acc_ref[...] += jnp.dot(a_ref[...], b_ref[...],
                            preferred_element_type=jnp.float32)

    @pl.when(pl.program_id(2) == pl.num_programs(2) - 1)
    def _():
        o_ref[...] = acc_ref[...].astype(o_ref.dtype)


def pallas_matmul(a, b, tm=1024, tn_max=256, tk_max=1024):
    """(M,K)@(K,N) -> (M,N) float32; inputs cast to bf16 for the MXU."""
    M, K = a.shape
    K2, N = b.shape
    assert K == K2
    a = a.astype(jnp.bfloat16)
    b = b.astype(jnp.bfloat16)

    Mp = _round_up(M, tm)
    if K <= tk_max:
        Kp = _round_up(K, 128)
        tk = Kp
    else:
        tk = 512
        Kp = _round_up(K, tk)
    if N <= tn_max:
        Np = _round_up(N, 128)
        tn = Np
    else:
        tn = tn_max
        Np = _round_up(N, tn)

    a_p = jnp.pad(a, ((0, Mp - M), (0, Kp - K)))
    b_p = jnp.pad(b, ((0, Kp - K), (0, Np - N)))

    out = pl.pallas_call(
        _mm_kernel,
        out_shape=jax.ShapeDtypeStruct((Mp, Np), jnp.float32),
        grid=(Mp // tm, Np // tn, Kp // tk),
        in_specs=[pl.BlockSpec((tm, tk), lambda i, j, k: (i, k)),
                  pl.BlockSpec((tk, tn), lambda i, j, k: (k, j))],
        out_specs=pl.BlockSpec((tm, tn), lambda i, j, k: (i, j)),
        scratch_shapes=[pltpu.VMEM((tm, tn), jnp.float32)],
        compiler_params=pltpu.CompilerParams(
            dimension_semantics=("parallel", "parallel", "arbitrary")),
    )(a_p, b_p)
    return out[:M, :N]


# ----------------------------------------------------------------------------
# Pallas kernel 2: fused multi-branch BN-affine * attention * sum + ReLU.
# ----------------------------------------------------------------------------
def _fused_kernel(x_ref, g_ref, b_ref, a_ref, o_ref):
    nb = x_ref.shape[0]
    y = (x_ref[0] * g_ref[0] + b_ref[0]) * a_ref[0]
    for i in range(1, nb):                      # Nb is small & static -> unrolled
        y = y + (x_ref[i] * g_ref[i] + b_ref[i]) * a_ref[i]
    o_ref[...] = jnp.maximum(y, 0.0)


def fused_bn_att_sum_relu(xs, scale, shift, att, tm=1024):
    """relu( sum_i (xs[i] * scale[i] + shift[i]) * att[i] )

    xs:    (Nb, M, C) f32   branch conv outputs (M = batch*spatial rows, C lanes)
    scale: (Nb, C)          per-branch per-channel BN scale
    shift: (Nb, C)          per-branch per-channel BN shift
    att:   (Nb, M)          per-branch per-pixel attention weight
    """
    Nb, M, C = xs.shape
    Mp = _round_up(M, tm)
    xs_p = jnp.pad(xs, ((0, 0), (0, Mp - M), (0, 0)))
    att_p = jnp.pad(att, ((0, 0), (0, Mp - M)))[:, :, None]     # (Nb, Mp, 1)
    g = scale[:, None, :].astype(jnp.float32)                   # (Nb, 1, C)
    s = shift[:, None, :].astype(jnp.float32)
    out = pl.pallas_call(
        _fused_kernel,
        out_shape=jax.ShapeDtypeStruct((Mp, C), jnp.float32),
        grid=(Mp // tm,),
        in_specs=[pl.BlockSpec((Nb, tm, C), lambda i: (0, i, 0)),
                  pl.BlockSpec((Nb, 1, C), lambda i: (0, 0, 0)),
                  pl.BlockSpec((Nb, 1, C), lambda i: (0, 0, 0)),
                  pl.BlockSpec((Nb, tm, 1), lambda i: (0, i, 0))],
        out_specs=pl.BlockSpec((tm, C), lambda i: (i, 0)),
        compiler_params=pltpu.CompilerParams(
            dimension_semantics=("parallel",)),
    )(xs_p, g, s, att_p)
    return out[:M]


# ----------------------------------------------------------------------------
# Conv wrappers (NHWC, im2col -> Pallas matmul)
# ----------------------------------------------------------------------------
def _im2col_3x3(x, dilation=1, padding=0):
    """NHWC im2col: (B*Ho*Wo, 9*C) rows, K ordered (kh, kw, c)."""
    if padding:
        x = jnp.pad(x, ((0, 0), (padding, padding), (padding, padding), (0, 0)))
    B, Hp, Wp, C = x.shape
    Ho, Wo = Hp - 2 * dilation, Wp - 2 * dilation
    slabs = [x[:, kh * dilation:kh * dilation + Ho,
               kw * dilation:kw * dilation + Wo, :]
             for kh in range(3) for kw in range(3)]
    patches = jnp.concatenate(slabs, axis=-1)                   # (B, Ho, Wo, 9*C)
    return patches.reshape(B * Ho * Wo, 9 * C), (B, Ho, Wo)


def conv2d_3x3(x, w, b=None, dilation=1, padding=0):
    Cout, Cin = w.shape[0], w.shape[1]
    A, (B, Ho, Wo) = _im2col_3x3(x, dilation, padding)
    Wm = w.transpose(2, 3, 1, 0).reshape(9 * Cin, Cout)
    out = pallas_matmul(A, Wm)
    if b is not None:
        out = out + b
    return out.reshape(B, Ho, Wo, Cout)


def conv2d_1x1(x, w, b=None):
    B, H, W, C = x.shape
    Cout = w.shape[0]
    out = pallas_matmul(x.reshape(B * H * W, C), w.reshape(Cout, C).T)
    if b is not None:
        out = out + b
    return out.reshape(B, H, W, Cout)


def conv_transpose_2x2(x, w, b):
    """ConvTranspose2d(kernel=2, stride=2); w: (Cin, Cout, 2, 2)."""
    B, H, W, Cin = x.shape
    Cout = w.shape[1]
    Wm = w.transpose(0, 2, 3, 1).reshape(Cin, 4 * Cout)
    out = pallas_matmul(x.reshape(B * H * W, Cin), Wm)
    out = out.reshape(B, H, W, 2, 2, Cout).transpose(0, 1, 3, 2, 4, 5)
    return out.reshape(B, 2 * H, 2 * W, Cout) + b


def _branch_convs(x, w, pads, dils):
    """All branches share `w` and have the same output size; their im2col rows are
    concatenated along M and fed to ONE MXU matmul (weight tile reused)."""
    Cout, Cin = w.shape[0], w.shape[1]
    A_list, info = [], None
    for pad, dil in zip(pads, dils):
        A, info = _im2col_3x3(x, dil, pad)
        A_list.append(A)
    A = jnp.concatenate(A_list, axis=0)                         # (Nb*M, 9*Cin)
    Wm = w.transpose(2, 3, 1, 0).reshape(9 * Cin, Cout)
    out = pallas_matmul(A, Wm)                                  # (Nb*M, Cout) f32
    B, Ho, Wo = info
    return out.reshape(len(pads), B * Ho * Wo, Cout)


# ----------------------------------------------------------------------------
# Small glue ops
# ----------------------------------------------------------------------------
def _bn_scale_shift(xs, eps=1e-5):
    """Training-mode BatchNorm2d (weight=1, bias=0) folded to scale/shift.
    xs: (Nb, M, C) with M = batch*spatial -> stats over axis 1 (== PyTorch N,H,W)."""
    mean = xs.mean(axis=1)
    var = xs.var(axis=1)
    g = jax.lax.rsqrt(var + eps)
    return g, -mean * g


def maxpool2(x):
    B, H, W, C = x.shape
    x = x[:, :H // 2 * 2, :W // 2 * 2, :]
    return x.reshape(B, H // 2, 2, W // 2, 2, C).max(axis=(2, 4))


def center_crop(x, th, tw):
    H, W = x.shape[1], x.shape[2]
    oh, ow = (H - th) // 2, (W - tw) // 2
    return x[:, oh:oh + th, ow:ow + tw, :]


# ----------------------------------------------------------------------------
# Autofocus_conv block
# ----------------------------------------------------------------------------
_PADS1 = (0, 0, 4, 8, 12)      # conv1 + the 4 loop branches (branch 0 duplicated
_DILS1 = (2, 2, 6, 10, 14)     # because the reference's self.bn1 -> bn_list1[0])
_PADS2 = (0, 4, 8, 12)
_DILS2 = (2, 6, 10, 14)


def autofocus_forward(p, x):
    """x: (B, H, W, Cin) f32 -> (B, H-8, W-8, Cout)."""
    B, H, W, _ = x.shape
    Cout = p['conv1_w'].shape[0]
    residual = x[:, 4:-4, 4:-4, :]

    # attention 1 (x.detach() is identity in a forward pass)
    att = jnp.maximum(conv2d_3x3(x, p['att11_w'], p['att11_b']), 0.0)
    att = conv2d_1x1(att, p['att12_w'], p['att12_b'])
    att = jax.nn.softmax(att, axis=-1)[:, 1:-1, 1:-1, :]        # (B, H-4, W-4, 4)
    M1 = B * (H - 4) * (W - 4)
    att1 = att.reshape(M1, 4)
    att_s1 = jnp.concatenate([att1[:, :1], att1], axis=1).T     # (5, M1): cols [0,0,1,2,3]

    xs1 = _branch_convs(x, p['conv1_w'], _PADS1, _DILS1)        # (5, M1, Cout)
    g1, s1 = _bn_scale_shift(xs1)
    x = fused_bn_att_sum_relu(xs1, g1, s1, att_s1).reshape(B, H - 4, W - 4, Cout)

    # attention 2 + second stage + BN(downsample(residual)) as an extra "branch"
    att2 = jnp.maximum(conv2d_3x3(x, p['att21_w'], p['att21_b']), 0.0)
    att2 = conv2d_1x1(att2, p['att22_w'], p['att22_b'])
    att2 = jax.nn.softmax(att2, axis=-1)[:, 1:-1, 1:-1, :]      # (B, H-8, W-8, 4)
    M2 = B * (H - 8) * (W - 8)
    att2 = att2.reshape(M2, 4)

    xs2 = _branch_convs(x, p['conv2_w'], _PADS2, _DILS2)        # (4, M2, Cout)
    res = conv2d_1x1(residual, p['down_w'], p['down_b']).reshape(1, M2, Cout)
    xs_all = jnp.concatenate([xs2, res], axis=0)                # (5, M2, Cout)
    g2, s2 = _bn_scale_shift(xs_all)
    att_s2 = jnp.concatenate([att2, jnp.ones((M2, 1), jnp.float32)], axis=1).T
    out = fused_bn_att_sum_relu(xs_all, g2, s2, att_s2)
    return out.reshape(B, H - 8, W - 8, Cout)


# ----------------------------------------------------------------------------
# Parameters
# ----------------------------------------------------------------------------
def _conv_init(key, cout, cin, k, bias=True):
    kw, kb = jax.random.split(key)
    w = jax.random.normal(kw, (cout, cin, k, k), jnp.float32) / (cin * k * k) ** 0.5
    if not bias:
        return w
    b = 0.01 * jax.random.normal(kb, (cout,), jnp.float32)
    return w, b


def _convT_init(key, cin, cout, k=2):
    kw, kb = jax.random.split(key)
    w = jax.random.normal(kw, (cin, cout, k, k), jnp.float32) / (cin * k * k) ** 0.5
    b = 0.01 * jax.random.normal(kb, (cout,), jnp.float32)
    return w, b


def make_autofocus_params(key, cin, cout, num_branches=4):
    ks = jax.random.split(key, 7)
    p = {}
    # conv1/conv2 biases omitted: training-mode BN subtracts the batch mean -> bias cancels.
    p['conv1_w'] = _conv_init(ks[0], cout, cin, 3, bias=False)
    p['att11_w'], p['att11_b'] = _conv_init(ks[1], cin // 2, cin, 3)
    # TODO(synk): reference declares convatt12 with in_channels=input_channel (shape bug);
    # built with in_channels=input_channel//2 so the forward is well-defined.
    p['att12_w'], p['att12_b'] = _conv_init(ks[2], num_branches, cin // 2, 1)
    p['conv2_w'] = _conv_init(ks[3], cout, cout, 3, bias=False)
    p['att21_w'], p['att21_b'] = _conv_init(ks[4], cout // 2, cout, 3)
    p['att22_w'], p['att22_b'] = _conv_init(ks[5], num_branches, cout // 2, 1)
    p['down_w'], p['down_b'] = _conv_init(ks[6], cout, cin, 1)
    return p


def make_unet_params(key, n_class, base=64):
    """base=64 reproduces the PyTorch spec's channel widths (64..1024)."""
    b1, b2, b3, b4, b5 = base, 2 * base, 4 * base, 8 * base, 16 * base
    ks = jax.random.split(key, 14)
    P = {}
    P['down1'] = make_autofocus_params(ks[0], 3, b1)
    P['down2'] = make_autofocus_params(ks[1], b1, b2)
    P['down3'] = make_autofocus_params(ks[2], b2, b3)
    P['down4'] = make_autofocus_params(ks[3], b3, b4)
    P['down5'] = make_autofocus_params(ks[4], b4, b5)
    P['up1_w'], P['up1_b'] = _convT_init(ks[5], b5, b4)
    P['cu1'] = make_autofocus_params(ks[6], 2 * b4, b4)
    P['up2_w'], P['up2_b'] = _convT_init(ks[7], b4, b3)
    P['cu2'] = make_autofocus_params(ks[8], 2 * b3, b3)
    P['up3_w'], P['up3_b'] = _convT_init(ks[9], b3, b2)
    P['cu3'] = make_autofocus_params(ks[10], 2 * b2, b2)
    P['up4_w'], P['up4_b'] = _convT_init(ks[11], b2, b1)
    P['cu4'] = make_autofocus_params(ks[12], 2 * b1, b1)
    P['out_w'], P['out_b'] = _conv_init(ks[13], n_class, b1, 1)
    return P


# ----------------------------------------------------------------------------
# U-Net forward (NHWC in, NCHW out to match the PyTorch module)
# ----------------------------------------------------------------------------
def unet_forward(P, x):
    c1 = autofocus_forward(P['down1'], x)
    c2 = autofocus_forward(P['down2'], maxpool2(c1))
    c3 = autofocus_forward(P['down3'], maxpool2(c2))
    c4 = autofocus_forward(P['down4'], maxpool2(c3))
    c5 = autofocus_forward(P['down5'], maxpool2(c4))

    def up_merge(skip, u):
        # TODO(synk): reference torch.cat fails on spatial mismatch (valid convs shrink
        # the skip path); the skip features are center-cropped to the upsampled size.
        skip = center_crop(skip, u.shape[1], u.shape[2])
        return jnp.concatenate([skip, u], axis=-1)

    u = conv_transpose_2x2(c5, P['up1_w'], P['up1_b'])
    d = autofocus_forward(P['cu1'], up_merge(c4, u))
    u = conv_transpose_2x2(d, P['up2_w'], P['up2_b'])
    d = autofocus_forward(P['cu2'], up_merge(c3, u))
    u = conv_transpose_2x2(d, P['up3_w'], P['up3_b'])
    d = autofocus_forward(P['cu3'], up_merge(c2, u))
    u = conv_transpose_2x2(d, P['up4_w'], P['up4_b'])
    d = autofocus_forward(P['cu4'], up_merge(c1, u))
    out = conv2d_1x1(d, P['out_w'], P['out_b'])
    return out.transpose(0, 3, 1, 2)       # NHWC -> NCHW


if __name__ == "__main__":
    key = jax.random.PRNGKey(0)
    pkey, xkey = jax.random.split(key)
    n_class = 2
    # Demo scale: base=4 gives channel widths (4, 8, 16, 32, 64); the PyTorch spec
    # uses base=64 (same graph, pass base=64 for full size).  376 is the smallest
    # spatial size for which every valid conv / maxpool / attention slice in the
    # reference forward geometry is non-empty.
    params = make_unet_params(pkey, n_class, base=4)
    x = jax.random.normal(xkey, (1, 376, 376, 3), jnp.float32)   # NHWC
    out = unet_forward(params, x)
    jax.block_until_ready(out)
    assert out.shape == (1, n_class, 8, 8), out.shape
    assert bool(jnp.all(jnp.isfinite(out)))
    print("KERNEL_OK")
</pallas_src>

<mosaic_0001>
module attributes {stable_mosaic.version = 11 : i64} {
  func.func @_mm_kernel(%arg0: i32, %arg1: i32, %arg2: i32, %arg3: memref<1024x128xbf16, #tpu.memory_space<vmem>>, %arg4: memref<128x128xbf16, #tpu.memory_space<vmem>>, %arg5: memref<1024x128xf32, #tpu.memory_space<vmem>>, %arg6: memref<1024x128xf32, #tpu.memory_space<vmem>>) attributes {dimension_semantics = [#tpu.dimension_semantics<parallel>, #tpu.dimension_semantics<parallel>, #tpu.dimension_semantics<arbitrary>], iteration_bounds = array<i64: 137, 1, 1>, scalar_prefetch = 0 : i64, scratch_operands = 1 : i64, tpu.core_type = #tpu.core_type<tc>, window_params = [{transform_indices = @transform_0, window_bounds = array<i64: 1024, 128>}, {transform_indices = @transform_1, window_bounds = array<i64: 128, 128>}, {transform_indices = @transform_2, window_bounds = array<i64: 1024, 128>}]} {
    %c0_i32 = arith.constant 0 : i32
    %0 = arith.cmpi eq, %arg2, %c0_i32 : i32
    %1 = arith.extui %0 : i1 to i32
    %c0_i32_0 = arith.constant 0 : i32
    %2 = arith.cmpi ne, %1, %c0_i32_0 : i32
    scf.if %2 {
      %cst_10 = arith.constant 0.000000e+00 : f32
      %12 = vector.broadcast %cst_10 : f32 to vector<1024x128xf32>
      %c0_11 = arith.constant 0 : index
      %c0_12 = arith.constant 0 : index
      %13 = vector.load %arg6[%c0_11, %c0_12] : memref<1024x128xf32, #tpu.memory_space<vmem>>, vector<1024x128xf32>
      tpu.vector_store %arg6[%c0_11, %c0_12], %12 {strides = array<i32>} : memref<1024x128xf32, #tpu.memory_space<vmem>>, vector<1024x128xf32>,
    } else {
    }
    %c0 = arith.constant 0 : index
    %c0_1 = arith.constant 0 : index
    %3 = vector.load %arg6[%c0, %c0_1] : memref<1024x128xf32, #tpu.memory_space<vmem>>, vector<1024x128xf32>
    %c0_2 = arith.constant 0 : index
    %c0_3 = arith.constant 0 : index
    %4 = vector.load %arg3[%c0_2, %c0_3] : memref<1024x128xbf16, #tpu.memory_space<vmem>>, vector<1024x128xbf16>
    %c0_4 = arith.constant 0 : index
    %c0_5 = arith.constant 0 : index
    %5 = vector.load %arg4[%c0_4, %c0_5] : memref<128x128xbf16, #tpu.memory_space<vmem>>, vector<128x128xbf16>
    %cst = arith.constant dense<0.000000e+00> : vector<1024x128xf32>
    %6 = tpu.matmul %4, %5, %cst {dimension_numbers = #tpu.dot_dimension_numbers<[1], [0], [0], [1], [0, 0, 1, 1], [], []>} : vector<1024x128xbf16>, vector<128x128xbf16>, vector<1024x128xf32> -> vector<1024x128xf32>
    %7 = arith.addf %3, %6 : vector<1024x128xf32>
    %c0_6 = arith.constant 0 : index
    %c0_7 = arith.constant 0 : index
    %8 = vector.load %arg6[%c0_6, %c0_7] : memref<1024x128xf32, #tpu.memory_space<vmem>>, vector<1024x128xf32>
    tpu.vector_store %arg6[%c0_6, %c0_7], %7 {strides = array<i32>} : memref<1024x128xf32, #tpu.memory_space<vmem>>, vector<1024x128xf32>,
    %c0_i32_8 = arith.constant 0 : i32
    %9 = arith.cmpi eq, %arg2, %c0_i32_8 : i32
    %10 = arith.extui %9 : i1 to i32
    %c0_i32_9 = arith.constant 0 : i32
    %11 = arith.cmpi ne, %10, %c0_i32_9 : i32
    scf.if %11 {
      %c0_10 = arith.constant 0 : index
      %c0_11 = arith.constant 0 : index
      %12 = vector.load %arg6[%c0_10, %c0_11] : memref<1024x128xf32, #tpu.memory_space<vmem>>, vector<1024x128xf32>
      %c0_12 = arith.constant 0 : index
      %c0_13 = arith.constant 0 : index
      %13 = vector.load %arg5[%c0_12, %c0_13] : memref<1024x128xf32, #tpu.memory_space<vmem>>, vector<1024x128xf32>
      tpu.vector_store %arg5[%c0_12, %c0_13], %12 {strides = array<i32>} : memref<1024x128xf32, #tpu.memory_space<vmem>>, vector<1024x128xf32>,
    } else {
    }
    return
  }
  func.func @transform_0(%arg0: i32, %arg1: i32, %arg2: i32) -> (i32, i32) {
    %c0_i32 = arith.constant 0 : i32
    return %arg0, %arg2 : i32, i32
  }
  func.func @transform_1(%arg0: i32, %arg1: i32, %arg2: i32) -> (i32, i32) {
    %c0_i32 = arith.constant 0 : i32
    return %arg2, %arg1 : i32, i32
  }
  func.func @transform_2(%arg0: i32, %arg1: i32, %arg2: i32) -> (i32, i32) {
    %c0_i32 = arith.constant 0 : i32
    return %arg0, %arg1 : i32, i32
  }
}

</mosaic_0001>

<bundles_post_ra>
// kernel: tpu_custom_call.1
= control target key start
LH: loop header
LB: loop body
LE: loop exit
PB: predicated region body
PF: predicated region fallthrough
CT: control target
= control target key end

     0   :  { %7 = vsyncpa [#allocation4], 0  ;;  %s3017_s0 = inlined_call_operand.hbm [shape: bf16[140288,128], index: 0, kind: input, shape index: {}]   ;;  %s3018_s1 = inlined_call_operand.hbm [shape: bf16[128,128], index: 1, kind: input, shape index: {}]   ;;  %s3019_s2 = inlined_call_operand.hbm [shape: f32[140288,128], index: 2, kind: output, shape index: {}]  }
   0x1   :  { %9 = vsyncpa [#allocation4 + $0x1], 0 }
   0x2   :  { %10 = vsyncpa [#allocation7], 0 }
   0x3   :  { %11 = vsyncpa [#allocation5], 0 }
   0x4   :  { %13 = vsyncpa [#allocation5 + $0x1], 0  ;;  %s2666_s9 = smov 0   ;;  %s2668_s10 = smov 0  }
   0x5   :  { %s2670_s11 = smov 0   ;;  %s2672_s12 = smov 0  }
   0x6   :  { %s2674_s13 = smov 0   ;;  %s2676_s14 = smov 0  }
   0x7 LB: > { %s2018_s15 = sadd.s32 4294967295, %s2644_s14   ;;  %s2019_s16 = sadd.s32 4294967294, %s2644_s14   ;;  %s2644_s14 = sphi %s2676_s14, %s19_s14   ;;  %s2640_s13 = sphi %s2674_s13, %s3031_s13   ;;  %s2636_s12 = sphi %s2672_s12, %s3030_s12   ;;  %s2632_s11 = sphi %s2670_s11, %s3029_s11   ;;  %s2628_s10 = sphi %s2668_s10, %s3028_s10   ;;  %s2624_s9 = sphi %s2666_s9, %s3027_s9  }
   0x8   : > { %p60_p0 = scmp.ne.s32.totalorder %s2628_s10, %s2624_s9  ;;  %p2700_p1 = scmp.eq.s32.totalorder %s2018_s15, 0 }
   0x9   : > { %p2704_p2 = scmp.eq.s32.totalorder %s2018_s15, 136  ;;  %p120_p3 = scmp.eq.s32.totalorder %s2019_s16, 136 }
   0xa   : > { %p2710_p4 = por %p2700_p1, %p60_p0  ;;  %p2020_p5 = scmp.ge.s32.totalorder %s2644_s14, 1 }
   0xb   : > { %p2715_p6 = por %p120_p3, %p60_p0  ;;  %p127_p7 = scmp.lt.s32.totalorder %s2644_s14, 138 }
   0xc   : > { %s142_s23 = sshll.u32 %s3018_s1, 4  ;;  %s2646_s25 = smov [#allocation6]   ;;  %s143_s23 = int_to_ptr.hbm [resolvable:$true] %s142_s23 }
   0xd   : > { %p2723_p8 = pnand %p2020_p5, %p127_p7  ;;  %s144_s26 = sshll.u32 %s2646_s25, 4  ;;  %s145_s26 = int_to_ptr.vmem [resolvable:$true] %s144_s26 }
   0xe   : > { %s2647_s27 = smov 64   ;;  %s2648_s28 = smov 4  }
   0xf   : > { %p2429_p9 = pneg %p2723_p8  ;;  %s38_s29 = sadd.s32 1, %s2640_s13 }
  0x10   : > { %p40_p11 = scmp.ge.s32.totalorder %s38_s29, 137  ;;  %s47_s30 = sadd.s32 1, %s2632_s11 }
  0x11   : > { %p2430_p10 = pnand %p2429_p9, %p2700_p1  ;;  %p54_p12 = scmp.ne.s32.totalorder %s2632_s11, %s2628_s10 }
  0x12   : > { %p55_p13 = scmp.eq.s32.totalorder %s2644_s14, 0  ;;  %s3033_s29 = smov (%p40_p11, %s38_s29), 0 }
  0x13   : > { %2432 = dma.hbm_to_vmem [thread:$0]  (!%p2430_p10), %s143_s23, 1024, %s145_s26, [#allocation7], %s2647_s27, %s2647_s27, %s2648_s28  }
  0x14   : > { %p2741_p0 = por %p55_p13, %p54_p12  ;;  %p2747_p3 = por %p2704_p2, %p54_p12 }
  0x15   : > { %s42_s5 = ssub.s32 %s2640_s13, %s3033_s29  ;;  %p2442_p5 = scmp.lt.s32.totalorder %s2644_s14, 137 }
  0x16   : > { %p45_p7 = scmp.eq.s32.totalorder %s42_s5, 0  ;;  %s158_s6 = sand.u32 1, %s2632_s11  }
  0x17   : > { %s2023_s7 = sshll.u32 %s158_s6, 9  ;;  %s2323_s15 = sshll.u32 %s2640_s13, 9 }
  0x18   : > { %s2756_s8 = scalar_select %p45_p7, %s2632_s11, %s47_s30  }
  0x19   : > { %s168_s22 = scalar_lea.hbm %s3017_s0, %s2323_s15  ;;  %s162_s23 = scalar_lea.vmem [#allocation3], %s2023_s7 }
  0x1a   : > { %s171_s25 = sshll.u32 %s162_s23, 4  ;;  %s169_s18 = sshll.u32 %s168_s22, 4  ;;  %s172_s25 = int_to_ptr.vmem [resolvable:$true] %s171_s25  ;;  %s170_s18 = int_to_ptr.hbm [resolvable:$true] %s169_s18 }
  0x1b   : > { %p2434_p2 = pnand %p2442_p5, %p2741_p0  ;;  %s159_s26 = scalar_lea.sflag [#allocation4], %s158_s6 }
  0x1c   : > { %183 = sbr.rel (%p2723_p8) target bundleno = 454 (0x1c6), region = 28  ;;  %s2770_s30 = sand.u32 (!%p2723_p8), 1, %s2628_s10  }
  0x1d   : > { %2436 = dma.hbm_to_vmem [thread:$0]  (!%p2434_p2), %s170_s18, 8192, %s172_s25, %s159_s26, %s2647_s27, %s2647_s27, %s2648_s28  }
  0x1e   : > { %s2027_s5 = sshll.u32 (!%p2723_p8), %s2770_s30, 9  ;;  %s186_s7 = scalar_lea.sflag (!%p2723_p8), [#allocation4], %s2770_s30 }
  0x1f   : > { %s2774_s15 = scalar_lea.vmem (!%p2723_p8), [#allocation3], %s2027_s5 }
  0x21   : > { %2611 = dma.done.wait (%p2710_p4), %s186_s7, 8192  }
  0x22   : > { %2613 = vsyncadd (%p2710_p4), %s186_s7, 4294959104 }
  0x23   : > { %2615 = dma.done.wait (%p2700_p1), [#allocation7], 1024  }
  0x24   : > { %2617 = vsyncadd (%p2700_p1), [#allocation7], 4294966272  ;;  %v2395_v0 = vld [vmem:[#allocation6 + $0x38] sm:$0xff]  ;;  %v2394_v1 = vld [vmem:[#allocation6 + $0x30] sm:$0xff]  ;;  %s2029_s17 = sshll.u32 %s2770_s30, 10  ;;  %s2396_s24 = sshll.u32 %s2636_s12, 10 }
  0x25   : > { %1055 = vmatpush.bf16.msra.mxu0 %v2395_v0  ;;  %2397 = vmatpush.bf16.msra.mxu1 %v2395_v0  ;;  %v2393_v2 = vld [vmem:[#allocation6 + $0x28] sm:$0xff]  ;;  %v2392_v3 = vld [vmem:[#allocation6 + $0x20] sm:$0xff]  ;;  %v2391_v4 = vld [vmem:[#allocation6 + $0x18] sm:$0xff]  ;;  %s2821_s19 = scalar_lea.vmem [#allocation8], %s2029_s17  ;;  %s1912_s3 = scalar_lea.hbm %s3019_s2, %s2396_s24 }
  0x26   : > { %2398 = vmatpush.bf16.msra.mxu2 %v2395_v0  ;;  %2399 = vmatpush.bf16.msra.mxu3 %v2395_v0  ;;  %v2390_v5 = vld [vmem:[#allocation6 + $0x10] sm:$0xff]  ;;  %v2389_v6 = vld [vmem:[#allocation6 + $0x8] sm:$0xff]  ;;  %v2388_v7 = vld [vmem:[#allocation6] sm:$0xff]  ;;  %s1913_s6 = sshll.u32 %s2821_s19, 4  ;;  %s1915_s16 = sshll.u32 %s1912_s3, 4  ;;  %s1914_s6 = int_to_ptr.vmem [resolvable:$true] %s1913_s6  ;;  %s1916_s16 = int_to_ptr.hbm [resolvable:$true] %s1915_s16 }
  0x27   : > { %v2324_v8 = vld [vmem:[%s2774_s15] sm:$0xff]  ;;  %v2325_v12 = vld [vmem:[%s2774_s15 + $0x8] sm:$0xff]  ;;  %v2326_v16 = vld [vmem:[%s2774_s15 + $0x10] sm:$0xff]  ;;  %s1900_s12 = scalar_lea.sflag [#allocation5], %s2770_s30  ;;  %s2572_s21 = sshra.s32 %s1916_s16, 4  ;;  %s2573_s21 = int_to_ptr.hbm [resolvable:$true] %s2572_s21 }
  0x28   : > { %v2340_v9 = vld [vmem:[%s2774_s15 + $0x80] sm:$0xff]  ;;  %v2341_v13 = vld [vmem:[%s2774_s15 + $0x88] sm:$0xff]  ;;  %v2342_v17 = vld [vmem:[%s2774_s15 + $0x90] sm:$0xff]  ;;  %s2574_s22 = scalar_lea.hbm %s2573_s21, 1024  ;;  %s2578_s18 = scalar_lea.hbm %s3019_s2, 140288 }
  0x29   : > { %1056 = vmatpush.bf16.msra.mxu0 %v2394_v1  ;;  %2400 = vmatpush.bf16.msra.mxu1 %v2394_v1  ;;  %v2356_v10 = vld [vmem:[%s2774_s15 + $0x100] sm:$0xff]  ;;  %v2357_v14 = vld [vmem:[%s2774_s15 + $0x108] sm:$0xff]  ;;  %v2358_v18 = vld [vmem:[%s2774_s15 + $0x110] sm:$0xff]  ;;  %p2575_p1 = scmp.ne.s32.totalorder %s2573_s21, %s2574_s22  ;;  %p2579_p9 = scmp.lt.s32.totalorder %s2573_s21, %s3019_s2 }
  0x2a   : > { %2401 = vmatpush.bf16.msra.mxu2 %v2394_v1  ;;  %2402 = vmatpush.bf16.msra.mxu3 %v2394_v1  ;;  %v2372_v11 = vld [vmem:[%s2774_s15 + $0x180] sm:$0xff]  ;;  %v2373_v15 = vld [vmem:[%s2774_s15 + $0x188] sm:$0xff]  ;;  %v2374_v19 = vld [vmem:[%s2774_s15 + $0x190] sm:$0xff]  ;;  %p2580_p10 = scmp.lt.s32.totalorder %s2578_s18, %s2574_s22 }
  0x2b   : > { %v2327_v20 = vld [vmem:[%s2774_s15 + $0x18] sm:$0xff]  ;;  %v2328_v24 = vld [vmem:[%s2774_s15 + $0x20] sm:$0xff]  ;;  %v2329_v28 = vld [vmem:[%s2774_s15 + $0x28] sm:$0xff]  ;;  %p2576_p4 = pnand %p2575_p1, %p2747_p3 }
  0x2c   : > { %v2343_v21 = vld [vmem:[%s2774_s15 + $0x98] sm:$0xff]  ;;  %v2344_v25 = vld [vmem:[%s2774_s15 + $0xa0] sm:$0xff]  ;;  %v2345_v29 = vld [vmem:[%s2774_s15 + $0xa8] sm:$0xff]  ;;  %p2581_p11 = por %p2580_p10, %p2579_p9 }
  0x2d   : > { %1057 = vmatpush.bf16.msra.mxu0 %v2393_v2  ;;  %2403 = vmatpush.bf16.msra.mxu1 %v2393_v2  ;;  %v2359_v22 = vld [vmem:[%s2774_s15 + $0x118] sm:$0xff]  ;;  %v2360_v26 = vld [vmem:[%s2774_s15 + $0x120] sm:$0xff]  ;;  %v2361_v30 = vld [vmem:[%s2774_s15 + $0x128] sm:$0xff]  ;;  %p2577_p8 = pneg %p2576_p4 }
  0x2e   : > { %2404 = vmatpush.bf16.msra.mxu2 %v2393_v2  ;;  %2405 = vmatpush.bf16.msra.mxu3 %v2393_v2  ;;  %v2375_v23 = vld [vmem:[%s2774_s15 + $0x198] sm:$0xff]  ;;  %v2376_v27 = vld [vmem:[%s2774_s15 + $0x1a0] sm:$0xff]  ;;  %v2377_v31 = vld [vmem:[%s2774_s15 + $0x1a8] sm:$0xff] }
  0x2f   : > { %v2330_v32 = vld [vmem:[%s2774_s15 + $0x30] sm:$0xff]  ;;  %v2331_v36 = vld [vmem:[%s2774_s15 + $0x38] sm:$0xff]  ;;  %v2332_v40 = vld [vmem:[%s2774_s15 + $0x40] sm:$0xff]  ;;  %p2582_p12 = pnand %p2581_p11, %p2577_p8 }
  0x30   : > { %v2346_v33 = vld [vmem:[%s2774_s15 + $0xb0] sm:$0xff]  ;;  %v2347_v37 = vld [vmem:[%s2774_s15 + $0xb8] sm:$0xff]  ;;  %v2348_v41 = vld [vmem:[%s2774_s15 + $0xc0] sm:$0xff] }
  0x31   : > { %1058 = vmatpush.bf16.msra.mxu0 %v2392_v3  ;;  %2406 = vmatpush.bf16.msra.mxu1 %v2392_v3  ;;  %v2362_v34 = vld [vmem:[%s2774_s15 + $0x130] sm:$0xff]  ;;  %v2363_v38 = vld [vmem:[%s2774_s15 + $0x138] sm:$0xff]  ;;  %v2364_v44 = vld [vmem:[%s2774_s15 + $0x140] sm:$0xff] }
  0x32   : > { %2407 = vmatpush.bf16.msra.mxu2 %v2392_v3  ;;  %2408 = vmatpush.bf16.msra.mxu3 %v2392_v3  ;;  %v2378_v35 = vld [vmem:[%s2774_s15 + $0x1b0] sm:$0xff]  ;;  %v2379_v39 = vld [vmem:[%s2774_s15 + $0x1b8] sm:$0xff]  ;;  %v2380_v45 = vld [vmem:[%s2774_s15 + $0x1c0] sm:$0xff] }
  0x33   : > { %v2333_v52 = vld [vmem:[%s2774_s15 + $0x48] sm:$0xff]  ;;  %v2334_v0 = vld [vmem:[%s2774_s15 + $0x50] sm:$0xff] }
  0x34   : > { %v2349_v53 = vld [vmem:[%s2774_s15 + $0xc8] sm:$0xff]  ;;  %v2350_v1 = vld [vmem:[%s2774_s15 + $0xd0] sm:$0xff] }
  0x35   : > { %1059 = vmatpush.bf16.msra.mxu0 %v2391_v4  ;;  %2409 = vmatpush.bf16.msra.mxu1 %v2391_v4  ;;  %v2365_v56 = vld [vmem:[%s2774_s15 + $0x148] sm:$0xff] }
  0x36   : > { %2410 = vmatpush.bf16.msra.mxu2 %v2391_v4  ;;  %2411 = vmatpush.bf16.msra.mxu3 %v2391_v4  ;;  %v2381_v57 = vld [vmem:[%s2774_s15 + $0x1c8] sm:$0xff]  ;;  %v2366_v4 = vld [vmem:[%s2774_s15 + $0x150] sm:$0xff] }
  0x39   : > { %1060 = vmatpush.bf16.msra.mxu0 %v2390_v5  ;;  %2412 = vmatpush.bf16.msra.mxu1 %v2390_v5 }
  0x3a   : > { %2413 = vmatpush.bf16.msra.mxu2 %v2390_v5  ;;  %2414 = vmatpush.bf16.msra.mxu3 %v2390_v5  ;;  %v2382_v5 = vld [vmem:[%s2774_s15 + $0x1d0] sm:$0xff] }
  0x3d   : > { %1061 = vmatpush.bf16.msra.mxu0 %v2389_v6  ;;  %2415 = vmatpush.bf16.msra.mxu1 %v2389_v6 }
  0x3e   : > { %2416 = vmatpush.bf16.msra.mxu2 %v2389_v6  ;;  %2417 = vmatpush.bf16.msra.mxu3 %v2389_v6 }
  0x41   : > { %1062 = vmatpush.bf16.msra.mxu0 %v2388_v7  ;;  %2418 = vmatpush.bf16.msra.mxu1 %v2388_v7 }
  0x42   : > { %2419 = vmatpush.bf16.msra.mxu2 %v2388_v7  ;;  %2420 = vmatpush.bf16.msra.mxu3 %v2388_v7 }
  0x44   : > { %1063 = vmatmul.bf16.vlgmr.msra.gmra.mxu0 %v2324_v8  ;;  %1143 = vmatmul.bf16.vlgmr.msra.gmra.mxu1 %v2340_v9 }
  0x45   : > { %1223 = vmatmul.bf16.vlgmr.msra.gmra.mxu2 %v2356_v10  ;;  %1303 = vmatmul.bf16.vlgmr.msra.gmra.mxu3 %v2372_v11 }
  0x54   : > { %1068 = vmatmul.bf16.gmra.mxu0 %v2325_v12  ;;  %1148 = vmatmul.bf16.gmra.mxu1 %v2341_v13  ;;  %v2335_v12 = vld [vmem:[%s2774_s15 + $0x58] sm:$0xff] }
  0x55   : > { %1228 = vmatmul.bf16.gmra.mxu2 %v2357_v14  ;;  %1308 = vmatmul.bf16.gmra.mxu3 %v2373_v15  ;;  %v2351_v13 = vld [vmem:[%s2774_s15 + $0xd8] sm:$0xff] }
  0x64   : > { %1073 = vmatmul.bf16.gmra.mxu0 %v2326_v16  ;;  %1153 = vmatmul.bf16.gmra.mxu1 %v2342_v17  ;;  %v2367_v16 = vld [vmem:[%s2774_s15 + $0x158] sm:$0xff] }
  0x65   : > { %1233 = vmatmul.bf16.gmra.mxu2 %v2358_v18  ;;  %1313 = vmatmul.bf16.gmra.mxu3 %v2374_v19  ;;  %v2383_v17 = vld [vmem:[%s2774_s15 + $0x1d8] sm:$0xff] }
  0x74   : > { %1078 = vmatmul.bf16.gmra.mxu0 %v2327_v20  ;;  %1158 = vmatmul.bf16.gmra.mxu1 %v2343_v21 }
  0x75   : > { %1238 = vmatmul.bf16.gmra.mxu2 %v2359_v22  ;;  %1318 = vmatmul.bf16.gmra.mxu3 %v2375_v23 }
  0x84   : > { %1083 = vmatmul.bf16.gmra.mxu0 %v2328_v24  ;;  %1163 = vmatmul.bf16.gmra.mxu1 %v2344_v25  ;;  %v2336_v24 = vld [vmem:[%s2774_s15 + $0x60] sm:$0xff] }
  0x85   : > { %1243 = vmatmul.bf16.gmra.mxu2 %v2360_v26  ;;  %1323 = vmatmul.bf16.gmra.mxu3 %v2376_v27  ;;  %v2352_v25 = vld [vmem:[%s2774_s15 + $0xe0] sm:$0xff] }
  0x94   : > { %1088 = vmatmul.bf16.gmra.mxu0 %v2329_v28  ;;  %1168 = vmatmul.bf16.gmra.mxu1 %v2345_v29  ;;  %v2368_v28 = vld [vmem:[%s2774_s15 + $0x160] sm:$0xff] }
  0x95   : > { %1248 = vmatmul.bf16.gmra.mxu2 %v2361_v30  ;;  %1328 = vmatmul.bf16.gmra.mxu3 %v2377_v31  ;;  %v2384_v29 = vld [vmem:[%s2774_s15 + $0x1e0] sm:$0xff] }
  0xa4   : > { %1093 = vmatmul.bf16.gmra.mxu0 %v2330_v32  ;;  %1173 = vmatmul.bf16.gmra.mxu1 %v2346_v33 }
  0xa5   : > { %1253 = vmatmul.bf16.gmra.mxu2 %v2362_v34  ;;  %1333 = vmatmul.bf16.gmra.mxu3 %v2378_v35 }
  0xb4   : > { %1098 = vmatmul.bf16.gmra.mxu0 %v2331_v36  ;;  %1178 = vmatmul.bf16.gmra.mxu1 %v2347_v37  ;;  %v2337_v36 = vld [vmem:[%s2774_s15 + $0x68] sm:$0xff] }
  0xb5   : > { %1258 = vmatmul.bf16.gmra.mxu2 %v2363_v38  ;;  %1338 = vmatmul.bf16.gmra.mxu3 %v2379_v39  ;;  %v2353_v37 = vld [vmem:[%s2774_s15 + $0xe8] sm:$0xff] }
  0xc1   : > { %v1064_v42 = vpop.f32.mrf.mxu0  ;;  %v1144_v43 = vpop.f32.mrf.mxu1 }
  0xc2   : > { %1771 = vst [vmem:[%s2821_s19] sm:$0xff] %v1064_v42 }
  0xc3   : > { %1803 = vst [vmem:[%s2821_s19 + $0x100] sm:$0xff] %v1144_v43 }
  0xc4   : > { %1103 = vmatmul.bf16.gmra.mxu0 %v2332_v40  ;;  %1183 = vmatmul.bf16.gmra.mxu1 %v2348_v41  ;;  %v2369_v40 = vld [vmem:[%s2774_s15 + $0x168] sm:$0xff] }
  0xc5   : > { %1263 = vmatmul.bf16.gmra.mxu2 %v2364_v44  ;;  %1343 = vmatmul.bf16.gmra.mxu3 %v2380_v45  ;;  %v2385_v41 = vld [vmem:[%s2774_s15 + $0x1e8] sm:$0xff] }
  0xc8   : > { %v1224_v46 = vpop.f32.mrf.mxu2  ;;  %v1304_v47 = vpop.f32.mrf.mxu3 }
  0xc9   : > { %1835 = vst [vmem:[%s2821_s19 + $0x200] sm:$0xff] %v1224_v46  ;;  %v1066_v48 = vpop.f32.mrf.mxu0  ;;  %v1146_v49 = vpop.f32.mrf.mxu1 }
  0xca   : > { %1867 = vst [vmem:[%s2821_s19 + $0x300] sm:$0xff] %v1304_v47 }
  0xcb   : > { %1772 = vst [vmem:[%s2821_s19 + $0x8] sm:$0xff] %v1066_v48  ;;  %v2338_v48 = vld [vmem:[%s2774_s15 + $0x70] sm:$0xff] }
  0xcc   : > { %1804 = vst [vmem:[%s2821_s19 + $0x108] sm:$0xff] %v1146_v49  ;;  %v2354_v49 = vld [vmem:[%s2774_s15 + $0xf0] sm:$0xff] }
  0xd0   : > { %v1226_v50 = vpop.f32.mrf.mxu2  ;;  %v1306_v51 = vpop.f32.mrf.mxu3 }
  0xd1   : > { %1836 = vst [vmem:[%s2821_s19 + $0x208] sm:$0xff] %v1226_v50  ;;  %v1069_v54 = vpop.f32.mrf.mxu0  ;;  %v1149_v55 = vpop.f32.mrf.mxu1 }
  0xd2   : > { %1868 = vst [vmem:[%s2821_s19 + $0x308] sm:$0xff] %v1306_v51 }
  0xd3   : > { %1773 = vst [vmem:[%s2821_s19 + $0x10] sm:$0xff] %v1069_v54 }
  0xd4   : > { %1805 = vst [vmem:[%s2821_s19 + $0x110] sm:$0xff] %v1149_v55  ;;  %1108 = vmatmul.bf16.gmra.mxu0 %v2333_v52  ;;  %1188 = vmatmul.bf16.gmra.mxu1 %v2349_v53  ;;  %v2370_v52 = vld [vmem:[%s2774_s15 + $0x170] sm:$0xff] }
  0xd5   : > { %1268 = vmatmul.bf16.gmra.mxu2 %v2365_v56  ;;  %1348 = vmatmul.bf16.gmra.mxu3 %v2381_v57  ;;  %v2386_v53 = vld [vmem:[%s2774_s15 + $0x1f0] sm:$0xff] }
  0xd8   : > { %v1229_v58 = vpop.f32.mrf.mxu2  ;;  %v1309_v59 = vpop.f32.mrf.mxu3 }
  0xd9   : > { %1837 = vst [vmem:[%s2821_s19 + $0x210] sm:$0xff] %v1229_v58  ;;  %v1071_v60 = vpop.f32.mrf.mxu0  ;;  %v1151_v61 = vpop.f32.mrf.mxu1 }
  0xda   : > { %1869 = vst [vmem:[%s2821_s19 + $0x310] sm:$0xff] %v1309_v59 }
  0xdb   : > { %1774 = vst [vmem:[%s2821_s19 + $0x18] sm:$0xff] %v1071_v60  ;;  %v2339_v60 = vld [vmem:[%s2774_s15 + $0x78] sm:$0xff] }
  0xdc   : > { %1806 = vst [vmem:[%s2821_s19 + $0x118] sm:$0xff] %v1151_v61  ;;  %v2355_v61 = vld [vmem:[%s2774_s15 + $0xf8] sm:$0xff] }
  0xe0   : > { %v1231_v62 = vpop.f32.mrf.mxu2  ;;  %v1311_v63 = vpop.f32.mrf.mxu3 }
  0xe1   : > { %1838 = vst [vmem:[%s2821_s19 + $0x218] sm:$0xff] %v1231_v62  ;;  %v1074_v2 = vpop.f32.mrf.mxu0  ;;  %v1154_v3 = vpop.f32.mrf.mxu1 }
  0xe2   : > { %1870 = vst [vmem:[%s2821_s19 + $0x318] sm:$0xff] %v1311_v63 }
  0xe3   : > { %1775 = vst [vmem:[%s2821_s19 + $0x20] sm:$0xff] %v1074_v2 }
  0xe4   : > { %1807 = vst [vmem:[%s2821_s19 + $0x120] sm:$0xff] %v1154_v3  ;;  %1113 = vmatmul.bf16.gmra.mxu0 %v2334_v0  ;;  %1193 = vmatmul.bf16.gmra.mxu1 %v2350_v1  ;;  %v2371_v0 = vld [vmem:[%s2774_s15 + $0x178] sm:$0xff] }
  0xe5   : > { %1273 = vmatmul.bf16.gmra.mxu2 %v2366_v4  ;;  %1353 = vmatmul.bf16.gmra.mxu3 %v2382_v5  ;;  %v2387_v1 = vld [vmem:[%s2774_s15 + $0x1f8] sm:$0xff] }
  0xe8   : > { %v1234_v6 = vpop.f32.mrf.mxu2  ;;  %v1314_v7 = vpop.f32.mrf.mxu3 }
  0xe9   : > { %1839 = vst [vmem:[%s2821_s19 + $0x220] sm:$0xff] %v1234_v6  ;;  %v1076_v8 = vpop.f32.mrf.mxu0  ;;  %v1156_v9 = vpop.f32.mrf.mxu1 }
  0xea   : > { %1871 = vst [vmem:[%s2821_s19 + $0x320] sm:$0xff] %v1314_v7 }
  0xeb   : > { %1776 = vst [vmem:[%s2821_s19 + $0x28] sm:$0xff] %v1076_v8 }
  0xec   : > { %1808 = vst [vmem:[%s2821_s19 + $0x128] sm:$0xff] %v1156_v9 }
  0xf0   : > { %v1236_v10 = vpop.f32.mrf.mxu2  ;;  %v1316_v11 = vpop.f32.mrf.mxu3 }
  0xf1   : > { %1840 = vst [vmem:[%s2821_s19 + $0x228] sm:$0xff] %v1236_v10  ;;  %v1079_v14 = vpop.f32.mrf.mxu0  ;;  %v1159_v15 = vpop.f32.mrf.mxu1 }
  0xf2   : > { %1872 = vst [vmem:[%s2821_s19 + $0x328] sm:$0xff] %v1316_v11 }
  0xf3   : > { %1777 = vst [vmem:[%s2821_s19 + $0x30] sm:$0xff] %v1079_v14 }
  0xf4   : > { %1809 = vst [vmem:[%s2821_s19 + $0x130] sm:$0xff] %v1159_v15  ;;  %1118 = vmatmul.bf16.gmra.mxu0 %v2335_v12  ;;  %1198 = vmatmul.bf16.gmra.mxu1 %v2351_v13 }
  0xf5   : > { %1278 = vmatmul.bf16.gmra.mxu2 %v2367_v16  ;;  %1358 = vmatmul.bf16.gmra.mxu3 %v2383_v17 }
  0xf8   : > { %v1239_v18 = vpop.f32.mrf.mxu2  ;;  %v1319_v19 = vpop.f32.mrf.mxu3 }
  0xf9   : > { %1841 = vst [vmem:[%s2821_s19 + $0x230] sm:$0xff] %v1239_v18  ;;  %v1081_v20 = vpop.f32.mrf.mxu0  ;;  %v1161_v21 = vpop.f32.mrf.mxu1 }
  0xfa   : > { %1873 = vst [vmem:[%s2821_s19 + $0x330] sm:$0xff] %v1319_v19 }
  0xfb   : > { %1778 = vst [vmem:[%s2821_s19 + $0x38] sm:$0xff] %v1081_v20 }
  0xfc   : > { %1810 = vst [vmem:[%s2821_s19 + $0x138] sm:$0xff] %v1161_v21 }
 0x100   : > { %v1241_v22 = vpop.f32.mrf.mxu2  ;;  %v1321_v23 = vpop.f32.mrf.mxu3 }
 0x101   : > { %1842 = vst [vmem:[%s2821_s19 + $0x238] sm:$0xff] %v1241_v22  ;;  %v1084_v26 = vpop.f32.mrf.mxu0  ;;  %v1164_v27 = vpop.f32.mrf.mxu1 }
 0x102   : > { %1874 = vst [vmem:[%s2821_s19 + $0x338] sm:$0xff] %v1321_v23 }
 0x103   : > { %1779 = vst [vmem:[%s2821_s19 + $0x40] sm:$0xff] %v1084_v26 }
 0x104   : > { %1811 = vst [vmem:[%s2821_s19 + $0x140] sm:$0xff] %v1164_v27  ;;  %1123 = vmatmul.bf16.gmra.mxu0 %v2336_v24  ;;  %1203 = vmatmul.bf16.gmra.mxu1 %v2352_v25 }
 0x105   : > { %1283 = vmatmul.bf16.gmra.mxu2 %v2368_v28  ;;  %1363 = vmatmul.bf16.gmra.mxu3 %v2384_v29 }
 0x108   : > { %v1244_v30 = vpop.f32.mrf.mxu2  ;;  %v1324_v31 = vpop.f32.mrf.mxu3 }
 0x109   : > { %1843 = vst [vmem:[%s2821_s19 + $0x240] sm:$0xff] %v1244_v30  ;;  %v1086_v32 = vpop.f32.mrf.mxu0  ;;  %v1166_v33 = vpop.f32.mrf.mxu1 }
 0x10a   : > { %1875 = vst [vmem:[%s2821_s19 + $0x340] sm:$0xff] %v1324_v31 }
 0x10b   : > { %1780 = vst [vmem:[%s2821_s19 + $0x48] sm:$0xff] %v1086_v32 }
 0x10c   : > { %1812 = vst [vmem:[%s2821_s19 + $0x148] sm:$0xff] %v1166_v33 }
 0x110   : > { %v1246_v34 = vpop.f32.mrf.mxu2  ;;  %v1326_v35 = vpop.f32.mrf.mxu3 }
 0x111   : > { %1844 = vst [vmem:[%s2821_s19 + $0x248] sm:$0xff] %v1246_v34  ;;  %v1089_v38 = vpop.f32.mrf.mxu0  ;;  %v1169_v39 = vpop.f32.mrf.mxu1 }
 0x112   : > { %1876 = vst [vmem:[%s2821_s19 + $0x348] sm:$0xff] %v1326_v35 }
 0x113   : > { %1781 = vst [vmem:[%s2821_s19 + $0x50] sm:$0xff] %v1089_v38 }
 0x114   : > { %1813 = vst [vmem:[%s2821_s19 + $0x150] sm:$0xff] %v1169_v39  ;;  %1128 = vmatmul.bf16.gmra.mxu0 %v2337_v36  ;;  %1208 = vmatmul.bf16.gmra.mxu1 %v2353_v37 }
 0x115   : > { %1288 = vmatmul.bf16.gmra.mxu2 %v2369_v40  ;;  %1368 = vmatmul.bf16.gmra.mxu3 %v2385_v41 }
 0x118   : > { %v1249_v42 = vpop.f32.mrf.mxu2  ;;  %v1329_v43 = vpop.f32.mrf.mxu3 }
 0x119   : > { %1845 = vst [vmem:[%s2821_s19 + $0x250] sm:$0xff] %v1249_v42  ;;  %v1091_v44 = vpop.f32.mrf.mxu0  ;;  %v1171_v45 = vpop.f32.mrf.mxu1 }
 0x11a   : > { %1877 = vst [vmem:[%s2821_s19 + $0x350] sm:$0xff] %v1329_v43 }
 0x11b   : > { %1782 = vst [vmem:[%s2821_s19 + $0x58] sm:$0xff] %v1091_v44 }
 0x11c   : > { %1814 = vst [vmem:[%s2821_s19 + $0x158] sm:$0xff] %v1171_v45 }
 0x120   : > { %v1251_v46 = vpop.f32.mrf.mxu2  ;;  %v1331_v47 = vpop.f32.mrf.mxu3 }
 0x121   : > { %1846 = vst [vmem:[%s2821_s19 + $0x258] sm:$0xff] %v1251_v46  ;;  %v1094_v50 = vpop.f32.mrf.mxu0  ;;  %v1174_v51 = vpop.f32.mrf.mxu1 }
 0x122   : > { %1878 = vst [vmem:[%s2821_s19 + $0x358] sm:$0xff] %v1331_v47 }
 0x123   : > { %1783 = vst [vmem:[%s2821_s19 + $0x60] sm:$0xff] %v1094_v50 }
 0x124   : > { %1815 = vst [vmem:[%s2821_s19 + $0x160] sm:$0xff] %v1174_v51  ;;  %1133 = vmatmul.bf16.gmra.mxu0 %v2338_v48  ;;  %1213 = vmatmul.bf16.gmra.mxu1 %v2354_v49 }
 0x125   : > { %1293 = vmatmul.bf16.gmra.mxu2 %v2370_v52  ;;  %1373 = vmatmul.bf16.gmra.mxu3 %v2386_v53 }
 0x128   : > { %v1254_v54 = vpop.f32.mrf.mxu2  ;;  %v1334_v55 = vpop.f32.mrf.mxu3 }
 0x129   : > { %1847 = vst [vmem:[%s2821_s19 + $0x260] sm:$0xff] %v1254_v54  ;;  %v1096_v56 = vpop.f32.mrf.mxu0  ;;  %v1176_v57 = vpop.f32.mrf.mxu1 }
 0x12a   : > { %1879 = vst [vmem:[%s2821_s19 + $0x360] sm:$0xff] %v1334_v55 }
 0x12b   : > { %1784 = vst [vmem:[%s2821_s19 + $0x68] sm:$0xff] %v1096_v56 }
 0x12c   : > { %1816 = vst [vmem:[%s2821_s19 + $0x168] sm:$0xff] %v1176_v57 }
 0x130   : > { %v1256_v58 = vpop.f32.mrf.mxu2  ;;  %v1336_v59 = vpop.f32.mrf.mxu3 }
 0x131   : > { %1848 = vst [vmem:[%s2821_s19 + $0x268] sm:$0xff] %v1256_v58  ;;  %v1099_v62 = vpop.f32.mrf.mxu0  ;;  %v1179_v63 = vpop.f32.mrf.mxu1 }
 0x132   : > { %1880 = vst [vmem:[%s2821_s19 + $0x368] sm:$0xff] %v1336_v59 }
 0x133   : > { %1785 = vst [vmem:[%s2821_s19 + $0x70] sm:$0xff] %v1099_v62 }
 0x134   : > { %1817 = vst [vmem:[%s2821_s19 + $0x170] sm:$0xff] %v1179_v63  ;;  %1138 = vmatmul.bf16.gmra.mxu0 %v2339_v60  ;;  %1218 = vmatmul.bf16.gmra.mxu1 %v2355_v61 }
 0x135   : > { %1298 = vmatmul.bf16.gmra.mxu2 %v2371_v0  ;;  %1378 = vmatmul.bf16.gmra.mxu3 %v2387_v1 }
 0x138   : > { %v1259_v2 = vpop.f32.mrf.mxu2  ;;  %v1339_v3 = vpop.f32.mrf.mxu3 }
 0x139   : > { %1849 = vst [vmem:[%s2821_s19 + $0x270] sm:$0xff] %v1259_v2  ;;  %v1101_v4 = vpop.f32.mrf.mxu0  ;;  %v1181_v5 = vpop.f32.mrf.mxu1 }
 0x13a   : > { %1881 = vst [vmem:[%s2821_s19 + $0x370] sm:$0xff] %v1339_v3 }
 0x13b   : > { %1786 = vst [vmem:[%s2821_s19 + $0x78] sm:$0xff] %v1101_v4 }
 0x13c   : > { %1818 = vst [vmem:[%s2821_s19 + $0x178] sm:$0xff] %v1181_v5 }
 0x140   : > { %v1261_v6 = vpop.f32.mrf.mxu2  ;;  %v1341_v7 = vpop.f32.mrf.mxu3 }
 0x141   : > { %1850 = vst [vmem:[%s2821_s19 + $0x278] sm:$0xff] %v1261_v6  ;;  %v1104_v8 = vpop.f32.mrf.mxu0  ;;  %v1184_v9 = vpop.f32.mrf.mxu1 }
 0x142   : > { %1882 = vst [vmem:[%s2821_s19 + $0x378] sm:$0xff] %v1341_v7 }
 0x143   : > { %1787 = vst [vmem:[%s2821_s19 + $0x80] sm:$0xff] %v1104_v8 }
 0x144   : > { %1819 = vst [vmem:[%s2821_s19 + $0x180] sm:$0xff] %v1184_v9 }
 0x148   : > { %v1264_v10 = vpop.f32.mrf.mxu2  ;;  %v1344_v11 = vpop.f32.mrf.mxu3 }
 0x149   : > { %1851 = vst [vmem:[%s2821_s19 + $0x280] sm:$0xff] %v1264_v10  ;;  %v1106_v12 = vpop.f32.mrf.mxu0  ;;  %v1186_v13 = vpop.f32.mrf.mxu1 }
 0x14a   : > { %1883 = vst [vmem:[%s2821_s19 + $0x380] sm:$0xff] %v1344_v11 }
 0x14b   : > { %1788 = vst [vmem:[%s2821_s19 + $0x88] sm:$0xff] %v1106_v12 }
 0x14c   : > { %1820 = vst [vmem:[%s2821_s19 + $0x188] sm:$0xff] %v1186_v13 }
 0x150   : > { %v1266_v14 = vpop.f32.mrf.mxu2  ;;  %v1346_v15 = vpop.f32.mrf.mxu3 }
 0x151   : > { %1852 = vst [vmem:[%s2821_s19 + $0x288] sm:$0xff] %v1266_v14  ;;  %v1109_v16 = vpop.f32.mrf.mxu0  ;;  %v1189_v17 = vpop.f32.mrf.mxu1 }
 0x152   : > { %1884 = vst [vmem:[%s2821_s19 + $0x388] sm:$0xff] %v1346_v15 }
 0x153   : > { %1789 = vst [vmem:[%s2821_s19 + $0x90] sm:$0xff] %v1109_v16 }
 0x154   : > { %1821 = vst [vmem:[%s2821_s19 + $0x190] sm:$0xff] %v1189_v17 }
 0x158   : > { %v1269_v18 = vpop.f32.mrf.mxu2  ;;  %v1349_v19 = vpop.f32.mrf.mxu3 }
 0x159   : > { %1853 = vst [vmem:[%s2821_s19 + $0x290] sm:$0xff] %v1269_v18  ;;  %v1111_v20 = vpop.f32.mrf.mxu0  ;;  %v1191_v21 = vpop.f32.mrf.mxu1 }
 0x15a   : > { %1885 = vst [vmem:[%s2821_s19 + $0x390] sm:$0xff] %v1349_v19 }
 0x15b   : > { %1790 = vst [vmem:[%s2821_s19 + $0x98] sm:$0xff] %v1111_v20 }
 0x15c   : > { %1822 = vst [vmem:[%s2821_s19 + $0x198] sm:$0xff] %v1191_v21 }
 0x160   : > { %v1271_v22 = vpop.f32.mrf.mxu2  ;;  %v1351_v23 = vpop.f32.mrf.mxu3 }
 0x161   : > { %1854 = vst [vmem:[%s2821_s19 + $0x298] sm:$0xff] %v1271_v22  ;;  %v1114_v24 = vpop.f32.mrf.mxu0  ;;  %v1194_v25 = vpop.f32.mrf.mxu1 }
 0x162   : > { %1886 = vst [vmem:[%s2821_s19 + $0x398] sm:$0xff] %v1351_v23 }
 0x163   : > { %1791 = vst [vmem:[%s2821_s19 + $0xa0] sm:$0xff] %v1114_v24 }
 0x164   : > { %1823 = vst [vmem:[%s2821_s19 + $0x1a0] sm:$0xff] %v1194_v25 }
 0x168   : > { %v1274_v26 = vpop.f32.mrf.mxu2  ;;  %v1354_v27 = vpop.f32.mrf.mxu3 }
 0x169   : > { %1855 = vst [vmem:[%s2821_s19 + $0x2a0] sm:$0xff] %v1274_v26  ;;  %v1116_v28 = vpop.f32.mrf.mxu0  ;;  %v1196_v29 = vpop.f32.mrf.mxu1 }
 0x16a   : > { %1887 = vst [vmem:[%s2821_s19 + $0x3a0] sm:$0xff] %v1354_v27 }
 0x16b   : > { %1792 = vst [vmem:[%s2821_s19 + $0xa8] sm:$0xff] %v1116_v28 }
 0x16c   : > { %1824 = vst [vmem:[%s2821_s19 + $0x1a8] sm:$0xff] %v1196_v29 }
 0x170   : > { %v1276_v30 = vpop.f32.mrf.mxu2  ;;  %v1356_v31 = vpop.f32.mrf.mxu3 }
 0x171   : > { %1856 = vst [vmem:[%s2821_s19 + $0x2a8] sm:$0xff] %v1276_v30  ;;  %v1119_v32 = vpop.f32.mrf.mxu0  ;;  %v1199_v33 = vpop.f32.mrf.mxu1 }
 0x172   : > { %1888 = vst [vmem:[%s2821_s19 + $0x3a8] sm:$0xff] %v1356_v31 }
 0x173   : > { %1793 = vst [vmem:[%s2821_s19 + $0xb0] sm:$0xff] %v1119_v32 }
 0x174   : > { %1825 = vst [vmem:[%s2821_s19 + $0x1b0] sm:$0xff] %v1199_v33 }
 0x178   : > { %v1279_v34 = vpop.f32.mrf.mxu2  ;;  %v1359_v35 = vpop.f32.mrf.mxu3 }
 0x179   : > { %1857 = vst [vmem:[%s2821_s19 + $0x2b0] sm:$0xff] %v1279_v34  ;;  %v1121_v36 = vpop.f32.mrf.mxu0  ;;  %v1201_v37 = vpop.f32.mrf.mxu1 }
 0x17a   : > { %1889 = vst [vmem:[%s2821_s19 + $0x3b0] sm:$0xff] %v1359_v35 }
 0x17b   : > { %1794 = vst [vmem:[%s2821_s19 + $0xb8] sm:$0xff] %v1121_v36 }
 0x17c   : > { %1826 = vst [vmem:[%s2821_s19 + $0x1b8] sm:$0xff] %v1201_v37 }
 0x180   : > { %v1281_v38 = vpop.f32.mrf.mxu2  ;;  %v1361_v39 = vpop.f32.mrf.mxu3 }
 0x181   : > { %1858 = vst [vmem:[%s2821_s19 + $0x2b8] sm:$0xff] %v1281_v38  ;;  %v1124_v40 = vpop.f32.mrf.mxu0  ;;  %v1204_v41 = vpop.f32.mrf.mxu1 }
 0x182   : > { %1890 = vst [vmem:[%s2821_s19 + $0x3b8] sm:$0xff] %v1361_v39 }
 0x183   : > { %1795 = vst [vmem:[%s2821_s19 + $0xc0] sm:$0xff] %v1124_v40 }
 0x184   : > { %1827 = vst [vmem:[%s2821_s19 + $0x1c0] sm:$0xff] %v1204_v41 }
 0x188   : > { %v1284_v42 = vpop.f32.mrf.mxu2  ;;  %v1364_v43 = vpop.f32.mrf.mxu3 }
 0x189   : > { %1859 = vst [vmem:[%s2821_s19 + $0x2c0] sm:$0xff] %v1284_v42  ;;  %v1126_v44 = vpop.f32.mrf.mxu0  ;;  %v1206_v45 = vpop.f32.mrf.mxu1 }
 0x18a   : > { %1891 = vst [vmem:[%s2821_s19 + $0x3c0] sm:$0xff] %v1364_v43 }
 0x18b   : > { %1796 = vst [vmem:[%s2821_s19 + $0xc8] sm:$0xff] %v1126_v44 }
 0x18c   : > { %1828 = vst [vmem:[%s2821_s19 + $0x1c8] sm:$0xff] %v1206_v45 }
 0x190   : > { %v1286_v46 = vpop.f32.mrf.mxu2  ;;  %v1366_v47 = vpop.f32.mrf.mxu3 }
 0x191   : > { %1860 = vst [vmem:[%s2821_s19 + $0x2c8] sm:$0xff] %v1286_v46  ;;  %v1129_v48 = vpop.f32.mrf.mxu0  ;;  %v1209_v49 = vpop.f32.mrf.mxu1 }
 0x192   : > { %1892 = vst [vmem:[%s2821_s19 + $0x3c8] sm:$0xff] %v1366_v47 }
 0x193   : > { %1797 = vst [vmem:[%s2821_s19 + $0xd0] sm:$0xff] %v1129_v48 }
 0x194   : > { %1829 = vst [vmem:[%s2821_s19 + $0x1d0] sm:$0xff] %v1209_v49 }
 0x198   : > { %v1289_v50 = vpop.f32.mrf.mxu2  ;;  %v1369_v51 = vpop.f32.mrf.mxu3 }
 0x199   : > { %1861 = vst [vmem:[%s2821_s19 + $0x2d0] sm:$0xff] %v1289_v50  ;;  %v1131_v52 = vpop.f32.mrf.mxu0  ;;  %v1211_v53 = vpop.f32.mrf.mxu1 }
 0x19a   : > { %1893 = vst [vmem:[%s2821_s19 + $0x3d0] sm:$0xff] %v1369_v51 }
 0x19b   : > { %1798 = vst [vmem:[%s2821_s19 + $0xd8] sm:$0xff] %v1131_v52 }
 0x19c   : > { %1830 = vst [vmem:[%s2821_s19 + $0x1d8] sm:$0xff] %v1211_v53 }
 0x1a0   : > { %v1291_v54 = vpop.f32.mrf.mxu2  ;;  %v1371_v55 = vpop.f32.mrf.mxu3 }
 0x1a1   : > { %1862 = vst [vmem:[%s2821_s19 + $0x2d8] sm:$0xff] %v1291_v54  ;;  %v1134_v56 = vpop.f32.mrf.mxu0  ;;  %v1214_v57 = vpop.f32.mrf.mxu1 }
 0x1a2   : > { %1894 = vst [vmem:[%s2821_s19 + $0x3d8] sm:$0xff] %v1371_v55 }
 0x1a3   : > { %1799 = vst [vmem:[%s2821_s19 + $0xe0] sm:$0xff] %v1134_v56 }
 0x1a4   : > { %1831 = vst [vmem:[%s2821_s19 + $0x1e0] sm:$0xff] %v1214_v57 }
 0x1a8   : > { %v1294_v58 = vpop.f32.mrf.mxu2  ;;  %v1374_v59 = vpop.f32.mrf.mxu3 }
 0x1a9   : > { %1863 = vst [vmem:[%s2821_s19 + $0x2e0] sm:$0xff] %v1294_v58  ;;  %v1136_v60 = vpop.f32.mrf.mxu0  ;;  %v1216_v61 = vpop.f32.mrf.mxu1 }
 0x1aa   : > { %1895 = vst [vmem:[%s2821_s19 + $0x3e0] sm:$0xff] %v1374_v59 }
 0x1ab   : > { %1800 = vst [vmem:[%s2821_s19 + $0xe8] sm:$0xff] %v1136_v60 }
 0x1ac   : > { %1832 = vst [vmem:[%s2821_s19 + $0x1e8] sm:$0xff] %v1216_v61 }
 0x1b0   : > { %v1296_v62 = vpop.f32.mrf.mxu2  ;;  %v1376_v63 = vpop.f32.mrf.mxu3 }
 0x1b1   : > { %1864 = vst [vmem:[%s2821_s19 + $0x2e8] sm:$0xff] %v1296_v62  ;;  %v1139_v0 = vpop.f32.mrf.mxu0  ;;  %v1219_v1 = vpop.f32.mrf.mxu1 }
 0x1b2   : > { %1896 = vst [vmem:[%s2821_s19 + $0x3e8] sm:$0xff] %v1376_v63 }
 0x1b3   : > { %1801 = vst [vmem:[%s2821_s19 + $0xf0] sm:$0xff] %v1139_v0 }
 0x1b4   : > { %1833 = vst [vmem:[%s2821_s19 + $0x1f0] sm:$0xff] %v1219_v1 }
 0x1b8   : > { %v1299_v2 = vpop.f32.mrf.mxu2  ;;  %v1379_v3 = vpop.f32.mrf.mxu3 }
 0x1b9   : > { %1865 = vst [vmem:[%s2821_s19 + $0x2f0] sm:$0xff] %v1299_v2  ;;  %v1141_v4 = vpop.f32.mrf.mxu0  ;;  %v1221_v5 = vpop.f32.mrf.mxu1 }
 0x1ba   : > { %1897 = vst [vmem:[%s2821_s19 + $0x3f0] sm:$0xff] %v1379_v3 }
 0x1bb   : > { %1802 = vst [vmem:[%s2821_s19 + $0xf8] sm:$0xff] %v1141_v4 }
 0x1bc   : > { %1834 = vst [vmem:[%s2821_s19 + $0x1f8] sm:$0xff] %v1221_v5 }
 0x1c0   : > { %v1301_v6 = vpop.f32.mrf.mxu2  ;;  %v1381_v7 = vpop.f32.mrf.mxu3 }
 0x1c1   : > { %1866 = vst [vmem:[%s2821_s19 + $0x2f8] sm:$0xff] %v1301_v6 }
 0x1c2   : > { %1898 = vst [vmem:[%s2821_s19 + $0x3f8] sm:$0xff] %v1381_v7 }
 0x1c3   : > { %2585 = shalt.err (!%p2582_p12)
}
 0x1c4   : > { %s2649_s30 = smov 128   ;;  %s2650_s7 = smov 8  }
 0x1c5   : > { %2427 = dma.vmem_to_hbm [thread:$0]  (%p2747_p3), %s1914_s6, 16384, %s1916_s16, %s1900_s12, %s2649_s30, %s2649_s30, %s2650_s7  }
 0x1c6 PF: > { %p2444_p13 = scmp.ge.s32.totalorder %s2644_s14, 2  ;;  %s1930_s15 = sand.u32 1, %s2624_s9  }
 0x1c7   : > { %s1931_s17 = scalar_lea.sflag [#allocation5], %s1930_s15 }
 0x1c8   : > { %p2438_p0 = pnand %p2444_p13, %p2715_p6 }
 0x1ca   : > { %p2439_p5 = pneg %p2438_p0 }
 0x1cc   : > { %2619 = dma.done.wait (%p2439_p5), %s1931_s17, 16384  }
 0x1cd   : > { %2621 = vsyncadd (%p2439_p5), %s1931_s17, 4294950912  ;;  %s19_s14 = sadd.s32 1, %s2644_s14   ;;  %s3027_s9 = smov %s2628_s10 }
 0x1ce   : > { %p16_p7 = scmp.ge.s32.totalorder %s19_s14, 139   ;;  %s3028_s10 = smov %s2632_s11 }
 0x1cf   : > { %s3029_s11 = smov %s2756_s8  ;;  %s3030_s12 = smov %s2640_s13 }
 0x1d0   : > { %s3031_s13 = smov %s3033_s29  ;;  %18 = sbr.rel (!%p16_p7) target bundleno = 7 (0x7), region = 86 }
 0x1d5   :  { %1937 = vsyncpa [#allocation4], 1 }
 0x1d6   :  { %1939 = vsyncpa [#allocation4 + $0x1], 1 }
 0x1d7   :  { %1940 = vsyncpa [#allocation7], 1 }
 0x1d8   :  { %1941 = vsyncpa [#allocation5], 1 }
 0x1d9   :  { %1943 = vsyncpa [#allocation5 + $0x1], 1 }

</bundles_post_ra>
